<compile_context>
chip_gen: v6e
topology: v6e:2x2x1
jax: 0.10.0
libtpu: 0.0.40
codegen_flags: <defaults>
</compile_context>

<pallas_src>
import jax
import jax.numpy as jnp
from jax.experimental import pallas as pl
from jax.experimental.pallas import tpu as pltpu


def _round_up(x, m):
    return ((x + m - 1) // m) * m


def speakernet_kernel(x_ref, w1_ref, b1_ref, w2_ref, b2_ref, wh_ref, bh_ref,
                      out_ref):
    # __S__ backbone: two dense layers with ReLU.  bf16 operands, f32 accumulation.
    h = jnp.dot(x_ref[...], w1_ref[...], preferred_element_type=jnp.float32)
    h = jnp.maximum(h + b1_ref[...], 0.0)
    e = jnp.dot(h.astype(w2_ref.dtype), w2_ref[...],
                preferred_element_type=jnp.float32)
    e = jnp.maximum(e + b2_ref[...], 0.0)
    # __F__ Factorization2: both heads fused into one lane-dense (E, 2D) matmul.
    out = jnp.dot(e.astype(wh_ref.dtype), wh_ref[...],
                  preferred_element_type=jnp.float32) + bh_ref[...]
    out_ref[...] = out.astype(out_ref.dtype)


def speakernet_forward(data, params, is_infer=True, row_tile=512):
    """data: (batch, num_utt, T) float32.  Returns (x_spk, x_dev) or x_spk."""
    T = data.shape[-1]
    x = data.reshape(-1, T)            # same flattening as PyTorch's data.reshape(-1, T)
    N = x.shape[0]
    w1, b1, w2, b2, wspk, bspk, wdev, bdev = params
    H, E, D = w1.shape[1], w2.shape[1], wspk.shape[1]

    # Fuse the two heads: (E, 2D) weight / (1, 2D) bias -> 128-lane output block.
    w_head = jnp.concatenate([wspk, wdev], axis=1)
    b_head = jnp.concatenate([bspk, bdev], axis=1)

    # Row tile: >= 8 sublanes, capped at row_tile so double-buffered x tiles stay
    # well inside every generation's scoped VMEM budget.
    tm = _round_up(min(row_tile, _round_up(N, 8)), 8)
    Np = _round_up(N, tm)
    if Np != N:
        x = jnp.pad(x, ((0, Np - N), (0, 0)))

    # bf16 for the HBM-dominant x stream and all weights; f32 biases + accumulation.
    xb = x.astype(jnp.bfloat16)
    w1b = w1.astype(jnp.bfloat16)
    w2b = w2.astype(jnp.bfloat16)
    whb = w_head.astype(jnp.bfloat16)

    const = lambda shape: pl.BlockSpec(shape, lambda i: (0,) * len(shape))

    out = pl.pallas_call(
        speakernet_kernel,
        grid=(Np // tm,),
        in_specs=[
            pl.BlockSpec((tm, T), lambda i: (i, 0)),     # x row tile (pipelined)
            const((T, H)), const((1, H)),                # w1, b1 (VMEM resident)
            const((H, E)), const((1, E)),                # w2, b2
            const((E, 2 * D)), const((1, 2 * D)),        # fused head weight / bias
        ],
        out_specs=pl.BlockSpec((tm, 2 * D), lambda i: (i, 0)),
        out_shape=jax.ShapeDtypeStruct((Np, 2 * D), jnp.float32),
        compiler_params=pltpu.CompilerParams(
            dimension_semantics=("parallel",)),          # no cross-row reduction
    )(xb, w1b, b1, w2b, b2, whb, b_head)

    x_spk = out[:N, :D]
    x_dev = out[:N, D:]
    if is_infer:
        return x_spk, x_dev
    return x_spk
    # TODO(synk): training branches ('optimizing_estimators'/'optimizing_networks')
    # require the aamsoftmax losses and CLUB MI estimators; not part of the
    # inference hot path implemented here.


def init_params(key, T, H, E, D):
    ks = jax.random.split(key, 8)
    def dense(kw, fan_in, fan_out):
        scale = 1.0 / jnp.sqrt(jnp.float32(fan_in))
        return jax.random.uniform(kw, (fan_in, fan_out), jnp.float32, -scale, scale)
    w1 = dense(ks[0], T, H)
    b1 = jax.random.uniform(ks[1], (1, H), jnp.float32, -0.05, 0.05)
    w2 = dense(ks[2], H, E)
    b2 = jax.random.uniform(ks[3], (1, E), jnp.float32, -0.05, 0.05)
    wspk = dense(ks[4], E, D)
    bspk = jax.random.uniform(ks[5], (1, D), jnp.float32, -0.05, 0.05)
    wdev = dense(ks[6], E, D)
    bdev = jax.random.uniform(ks[7], (1, D), jnp.float32, -0.05, 0.05)
    return (w1, b1, w2, b2, wspk, bspk, wdev, bdev)


if __name__ == "__main__":
    # Small shapes: batch=2, num_utt=2, frame length T=256, hidden=128,
    # embedding=128, num_out=64.
    batch, num_utt, T = 2, 2, 256
    H, E, D = 128, 128, 64

    key = jax.random.PRNGKey(0)
    k_data, k_par = jax.random.split(key)
    data = jax.random.normal(k_data, (batch, num_utt, T), dtype=jnp.float32)
    params = init_params(k_par, T, H, E, D)

    x_spk, x_dev = speakernet_forward(data, params, is_infer=True)
    jax.block_until_ready((x_spk, x_dev))

    # Pure-JAX reference with identical bf16 operand casts / f32 accumulation.
    w1, b1, w2, b2, wspk, bspk, wdev, bdev = params
    xf = data.reshape(-1, T).astype(jnp.bfloat16)
    w_head = jnp.concatenate([wspk, wdev], axis=1).astype(jnp.bfloat16)
    b_head = jnp.concatenate([bspk, bdev], axis=1)
    h = jnp.maximum(jnp.dot(xf, w1.astype(jnp.bfloat16),
                            preferred_element_type=jnp.float32) + b1, 0.0)
    e = jnp.maximum(jnp.dot(h.astype(jnp.bfloat16), w2.astype(jnp.bfloat16),
                            preferred_element_type=jnp.float32) + b2, 0.0)
    ref = jnp.dot(e.astype(jnp.bfloat16), w_head,
                  preferred_element_type=jnp.float32) + b_head
    ref_spk, ref_dev = ref[:, :D], ref[:, D:]

    assert x_spk.shape == (batch * num_utt, D) and x_dev.shape == (batch * num_utt, D)
    assert jnp.allclose(x_spk, ref_spk, atol=2e-3, rtol=2e-3)
    assert jnp.allclose(x_dev, ref_dev, atol=2e-3, rtol=2e-3)

    print("KERNEL_OK")
</pallas_src>

<mosaic_0001>
module attributes {stable_mosaic.version = 11 : i64} {
  func.func @speakernet_kernel(%arg0: i32, %arg1: memref<8x256xbf16, #tpu.memory_space<vmem>>, %arg2: memref<256x128xbf16, #tpu.memory_space<vmem>>, %arg3: memref<1x128xf32, #tpu.memory_space<vmem>>, %arg4: memref<128x128xbf16, #tpu.memory_space<vmem>>, %arg5: memref<1x128xf32, #tpu.memory_space<vmem>>, %arg6: memref<128x128xbf16, #tpu.memory_space<vmem>>, %arg7: memref<1x128xf32, #tpu.memory_space<vmem>>, %arg8: memref<8x128xf32, #tpu.memory_space<vmem>>) attributes {dimension_semantics = [#tpu.dimension_semantics<parallel>], iteration_bounds = array<i64: 1>, scalar_prefetch = 0 : i64, scratch_operands = 0 : i64, tpu.core_type = #tpu.core_type<tc>, window_params = [{transform_indices = @transform_0, window_bounds = array<i64: 8, 256>}, {pipeline_mode = #tpu.pipeline_mode<synchronous>, transform_indices = @transform_1, window_bounds = array<i64: 256, 128>}, {pipeline_mode = #tpu.pipeline_mode<synchronous>, transform_indices = @transform_2, window_bounds = array<i64: 1, 128>}, {pipeline_mode = #tpu.pipeline_mode<synchronous>, transform_indices = @transform_3, window_bounds = array<i64: 128, 128>}, {pipeline_mode = #tpu.pipeline_mode<synchronous>, transform_indices = @transform_4, window_bounds = array<i64: 1, 128>}, {pipeline_mode = #tpu.pipeline_mode<synchronous>, transform_indices = @transform_5, window_bounds = array<i64: 128, 128>}, {pipeline_mode = #tpu.pipeline_mode<synchronous>, transform_indices = @transform_6, window_bounds = array<i64: 1, 128>}, {transform_indices = @transform_7, window_bounds = array<i64: 8, 128>}]} {
    %c0 = arith.constant 0 : index
    %c0_0 = arith.constant 0 : index
    %0 = vector.load %arg1[%c0, %c0_0] : memref<8x256xbf16, #tpu.memory_space<vmem>>, vector<8x256xbf16>
    %c0_1 = arith.constant 0 : index
    %c0_2 = arith.constant 0 : index
    %1 = vector.load %arg2[%c0_1, %c0_2] : memref<256x128xbf16, #tpu.memory_space<vmem>>, vector<256x128xbf16>
    %cst = arith.constant dense<0.000000e+00> : vector<8x128xf32>
    %2 = tpu.matmul %0, %1, %cst {dimension_numbers = #tpu.dot_dimension_numbers<[1], [0], [0], [1], [0, 0, 1, 1], [], []>} : vector<8x256xbf16>, vector<256x128xbf16>, vector<8x128xf32> -> vector<8x128xf32>
    %c0_3 = arith.constant 0 : index
    %c0_4 = arith.constant 0 : index
    %3 = vector.load %arg3[%c0_3, %c0_4] : memref<1x128xf32, #tpu.memory_space<vmem>>, vector<1x128xf32>
    %4 = vector.broadcast %3 : vector<1x128xf32> to vector<8x128xf32>
    %5 = arith.addf %2, %4 : vector<8x128xf32>
    %cst_5 = arith.constant 0.000000e+00 : f32
    %6 = vector.broadcast %cst_5 : f32 to vector<8x128xf32>
    %7 = arith.maximumf %5, %6 : vector<8x128xf32>
    %8 = arith.truncf %7 : vector<8x128xf32> to vector<8x128xbf16>
    %c0_6 = arith.constant 0 : index
    %c0_7 = arith.constant 0 : index
    %9 = vector.load %arg4[%c0_6, %c0_7] : memref<128x128xbf16, #tpu.memory_space<vmem>>, vector<128x128xbf16>
    %cst_8 = arith.constant dense<0.000000e+00> : vector<8x128xf32>
    %10 = tpu.matmul %8, %9, %cst_8 {dimension_numbers = #tpu.dot_dimension_numbers<[1], [0], [0], [1], [0, 0, 1, 1], [], []>} : vector<8x128xbf16>, vector<128x128xbf16>, vector<8x128xf32> -> vector<8x128xf32>
    %c0_9 = arith.constant 0 : index
    %c0_10 = arith.constant 0 : index
    %11 = vector.load %arg5[%c0_9, %c0_10] : memref<1x128xf32, #tpu.memory_space<vmem>>, vector<1x128xf32>
    %12 = vector.broadcast %11 : vector<1x128xf32> to vector<8x128xf32>
    %13 = arith.addf %10, %12 : vector<8x128xf32>
    %cst_11 = arith.constant 0.000000e+00 : f32
    %14 = vector.broadcast %cst_11 : f32 to vector<8x128xf32>
    %15 = arith.maximumf %13, %14 : vector<8x128xf32>
    %16 = arith.truncf %15 : vector<8x128xf32> to vector<8x128xbf16>
    %c0_12 = arith.constant 0 : index
    %c0_13 = arith.constant 0 : index
    %17 = vector.load %arg6[%c0_12, %c0_13] : memref<128x128xbf16, #tpu.memory_space<vmem>>, vector<128x128xbf16>
    %cst_14 = arith.constant dense<0.000000e+00> : vector<8x128xf32>
    %18 = tpu.matmul %16, %17, %cst_14 {dimension_numbers = #tpu.dot_dimension_numbers<[1], [0], [0], [1], [0, 0, 1, 1], [], []>} : vector<8x128xbf16>, vector<128x128xbf16>, vector<8x128xf32> -> vector<8x128xf32>
    %c0_15 = arith.constant 0 : index
    %c0_16 = arith.constant 0 : index
    %19 = vector.load %arg7[%c0_15, %c0_16] : memref<1x128xf32, #tpu.memory_space<vmem>>, vector<1x128xf32>
    %20 = vector.broadcast %19 : vector<1x128xf32> to vector<8x128xf32>
    %21 = arith.addf %18, %20 : vector<8x128xf32>
    %c0_17 = arith.constant 0 : index
    %c0_18 = arith.constant 0 : index
    %22 = vector.load %arg8[%c0_17, %c0_18] : memref<8x128xf32, #tpu.memory_space<vmem>>, vector<8x128xf32>
    tpu.vector_store %arg8[%c0_17, %c0_18], %21 {strides = array<i32>} : memref<8x128xf32, #tpu.memory_space<vmem>>, vector<8x128xf32>,
    return
  }
  func.func @transform_0(%arg0: i32) -> (i32, i32) {
    %c0_i32 = arith.constant 0 : i32
    %c0_i32_0 = arith.constant 0 : i32
    return %arg0, %c0_i32 : i32, i32
  }
  func.func @transform_1(%arg0: i32) -> (i32, i32) {
    %c0_i32 = arith.constant 0 : i32
    %c0_i32_0 = arith.constant 0 : i32
    %c0_i32_1 = arith.constant 0 : i32
    return %c0_i32, %c0_i32_0 : i32, i32
  }
  func.func @transform_2(%arg0: i32) -> (i32, i32) {
    %c0_i32 = arith.constant 0 : i32
    %c0_i32_0 = arith.constant 0 : i32
    %c0_i32_1 = arith.constant 0 : i32
    return %c0_i32, %c0_i32_0 : i32, i32
  }
  func.func @transform_3(%arg0: i32) -> (i32, i32) {
    %c0_i32 = arith.constant 0 : i32
    %c0_i32_0 = arith.constant 0 : i32
    %c0_i32_1 = arith.constant 0 : i32
    return %c0_i32, %c0_i32_0 : i32, i32
  }
  func.func @transform_4(%arg0: i32) -> (i32, i32) {
    %c0_i32 = arith.constant 0 : i32
    %c0_i32_0 = arith.constant 0 : i32
    %c0_i32_1 = arith.constant 0 : i32
    return %c0_i32, %c0_i32_0 : i32, i32
  }
  func.func @transform_5(%arg0: i32) -> (i32, i32) {
    %c0_i32 = arith.constant 0 : i32
    %c0_i32_0 = arith.constant 0 : i32
    %c0_i32_1 = arith.constant 0 : i32
    return %c0_i32, %c0_i32_0 : i32, i32
  }
  func.func @transform_6(%arg0: i32) -> (i32, i32) {
    %c0_i32 = arith.constant 0 : i32
    %c0_i32_0 = arith.constant 0 : i32
    %c0_i32_1 = arith.constant 0 : i32
    return %c0_i32, %c0_i32_0 : i32, i32
  }
  func.func @transform_7(%arg0: i32) -> (i32, i32) {
    %c0_i32 = arith.constant 0 : i32
    %c0_i32_0 = arith.constant 0 : i32
    return %arg0, %c0_i32 : i32, i32
  }
}

</mosaic_0001>

<bundles_post_ra>
// kernel: tpu_custom_call.1
= control target key start
LH: loop header
LB: loop body
LE: loop exit
PB: predicated region body
PF: predicated region fallthrough
CT: control target
= control target key end

     0   :  { %12 = vsyncpa [#allocation3], 0  ;;  %s876_s0 = inlined_call_operand.hbm [shape: bf16[8,256], index: 0, kind: input, shape index: {}]   ;;  %s877_s1 = inlined_call_operand.hbm [shape: bf16[256,128], index: 1, kind: input, shape index: {}]   ;;  %s878_s2 = inlined_call_operand.vmem [shape: f32[1,128], index: 2, kind: input, shape index: {}]   ;;  %s879_s3 = inlined_call_operand.hbm [shape: bf16[128,128], index: 3, kind: input, shape index: {}]   ;;  %s880_s4 = inlined_call_operand.vmem [shape: f32[1,128], index: 4, kind: input, shape index: {}]   ;;  %s881_s5 = inlined_call_operand.hbm [shape: bf16[128,128], index: 5, kind: input, shape index: {}]   ;;  %s882_s6 = inlined_call_operand.vmem [shape: f32[1,128], index: 6, kind: input, shape index: {}]   ;;  %s883_s7 = inlined_call_operand.hbm [shape: f32[8,128], index: 7, kind: output, shape index: {}]  }
   0x1   :  { %13 = vsyncpa [#allocation6], 0 }
   0x2   :  { %14 = vsyncpa [#allocation9], 0 }
   0x3   :  { %15 = vsyncpa [#allocation4], 0  ;;  %s776_s24 = smov [#allocation5]  }
   0x4   :  { %s31_s25 = sshll.u32 %s776_s24, 4  ;;  %s32_s25 = int_to_ptr.vmem [resolvable:$true] %s31_s25 }
   0x5   :  { %s676_s26 = scalar_lea.vmem %s32_s25, 2048  ;;  %p681_p1 = scmp.lt.s32.totalorder %s32_s25, %s32_s25 }
   0x6   :  { %p677_p0 = scmp.ne.s32.totalorder %s32_s25, %s676_s26  ;;  %p682_p2 = scmp.lt.s32.totalorder %s676_s26, %s676_s26 }
   0x8   :  { %p683_p3 = por %p682_p2, %p681_p1 }
   0xa   :  { %p684_p4 = pnand %p683_p3, %p677_p0 }
   0xc   :  { %687 = shalt.err (!%p684_p4)
}
   0xd   :  { %s777_s27 = smov 64   ;;  %s778_s28 = smov 4  }
   0xe   :  { %37 = dma.hbm_to_vmem [thread:$0]  %s877_s1, 2048, %s32_s25, [#allocation6], %s777_s27, %s777_s27, %s778_s28  }
   0xf   :  { %s779_s8 = smov [#allocation2]   ;;  %s780_s10 = smov [#allocation7]  }
  0x10   :  { %s22_s9 = sshll.u32 %s779_s8, 4  ;;  %s45_s11 = sshll.u32 %s780_s10, 4  ;;  %s23_s9 = int_to_ptr.vmem [resolvable:$true] %s22_s9  ;;  %s46_s11 = int_to_ptr.vmem [resolvable:$true] %s45_s11 }
  0x11   :  { %s696_s12 = scalar_lea.vmem %s23_s9, 128  ;;  %p701_p6 = scmp.lt.s32.totalorder %s23_s9, %s23_s9 }
  0x12   :  { %p697_p5 = scmp.ne.s32.totalorder %s23_s9, %s696_s12  ;;  %p702_p7 = scmp.lt.s32.totalorder %s696_s12, %s696_s12 }
  0x14   :  { %p703_p8 = por %p702_p7, %p701_p6 }
  0x16   :  { %p704_p9 = pnand %p703_p8, %p697_p5 }
  0x18   :  { %707 = shalt.err (!%p704_p9)
}
  0x19   :  { %25 = dma.hbm_to_vmem [thread:$0]  %s876_s0, 128, %s23_s9, [#allocation3]  }
  0x1a   :  { %s716_s15 = scalar_lea.vmem %s46_s11, 1024  ;;  %p721_p11 = scmp.lt.s32.totalorder %s46_s11, %s46_s11 }
  0x1b   :  { %p717_p10 = scmp.ne.s32.totalorder %s46_s11, %s716_s15  ;;  %p722_p12 = scmp.lt.s32.totalorder %s716_s15, %s716_s15 }
  0x1d   :  { %p723_p13 = por %p722_p12, %p721_p11 }
  0x1f   :  { %p724_p0 = pnand %p723_p13, %p717_p10 }
  0x21   :  { %727 = shalt.err (!%p724_p0)
}
  0x22   :  { %51 = dma.hbm_to_vmem [thread:$0]  %s879_s3, 1024, %s46_s11, [#allocation6], %s777_s27, %s777_s27, %s778_s28  }
  0x23   :  { %s781_s17 = smov [#allocation8]  }
  0x24   :  { %s59_s18 = sshll.u32 %s781_s17, 4  ;;  %s60_s18 = int_to_ptr.vmem [resolvable:$true] %s59_s18 }
  0x25   :  { %s736_s19 = scalar_lea.vmem %s60_s18, 1024  ;;  %p741_p2 = scmp.lt.s32.totalorder %s60_s18, %s60_s18 }
  0x26   :  { %p737_p1 = scmp.ne.s32.totalorder %s60_s18, %s736_s19  ;;  %p742_p3 = scmp.lt.s32.totalorder %s736_s19, %s736_s19 }
  0x28   :  { %p743_p4 = por %p742_p3, %p741_p2 }
  0x2a   :  { %p744_p5 = pnand %p743_p4, %p737_p1 }
  0x2c   :  { %747 = shalt.err (!%p744_p5)
}
  0x2d   :  { %65 = dma.hbm_to_vmem [thread:$0]  %s881_s5, 1024, %s60_s18, [#allocation9], %s777_s27, %s777_s27, %s778_s28  }
  0x2e   :  { %768 = dma.done.wait [#allocation3], 128  }
  0x2f   :  { %769 = vsyncadd [#allocation3], 4294967168 }
  0x30   :  { %770 = dma.done.wait [#allocation6], 3072  }
  0x31   :  { %771 = vsyncadd [#allocation6], 4294964224 }
  0x32   :  { %772 = dma.done.wait [#allocation9], 1024  }
  0x33   :  { %773 = vsyncadd [#allocation9], 4294966272  ;;  %v782_v0 = vmov 0.0   ;;  %v634_v1 = vld [vmem:[#allocation5 + $0x78] sm:$0xff]   ;;  %v636_v3 = vld [vmem:[#allocation5 + $0x70] sm:$0xff]   ;;  %vm783_vm0 = vmmov 0  }
  0x34   :  { %585 = vmatprep.subr.bf16.mxu1 %v782_v0  ;;  %v635_v2 = vld [vmem:[#allocation5 + $0x38] sm:$0xff]   ;;  %545 = vmatprep.subr.bf16.mxu0 %v634_v1  ;;  %v637_v4 = vld [vmem:[#allocation5 + $0x30] sm:$0xff]   ;;  %v638_v5 = vld [vmem:[#allocation5 + $0x68] sm:$0xff]   ;;  %s784_s24 = smov [#allocation10]  }
  0x35   :  { %546 = vmatpush3.bf16.msra.mxu0 %v635_v2  ;;  %v639_v6 = vld [vmem:[#allocation5 + $0x28] sm:$0xff]   ;;  %v640_v7 = vld [vmem:[#allocation5 + $0x60] sm:$0xff]   ;;  %v642_v9 = vld [vmem:[#allocation5 + $0x58] sm:$0xff]   ;;  %601 = vmatprep.mubr.msk.bf16.mxu1 %vm783_vm0, %v782_v0  ;;  %s497_s25 = sshll.u32 %s784_s24, 4  ;;  %s498_s25 = int_to_ptr.vmem [resolvable:$true] %s497_s25 }
  0x36   :  { %547 = vmatprep.subr.bf16.mxu0 %v636_v3  ;;  %v641_v8 = vld [vmem:[#allocation5 + $0x20] sm:$0xff]   ;;  %v643_v10 = vld [vmem:[#allocation5 + $0x18] sm:$0xff]   ;;  %v644_v11 = vld [vmem:[#allocation5 + $0x50] sm:$0xff]   ;;  %p753_p7 = scmp.lt.s32.totalorder %s498_s25, %s498_s25 }
  0x37   :  { %v81_v12 = vld [vmem:[#allocation2] sm:$0xff]  ;;  %v645_v15 = vld [vmem:[#allocation5 + $0x10] sm:$0xff]   ;;  %v646_v16 = vld [vmem:[#allocation5 + $0x48] sm:$0xff]  }
  0x38   :  { %v510_v13 = vcombine.high %v81_v12, %v81_v12  ;;  %v652_v14 = vld [vmem:[#allocation7 + $0x38] sm:$0xff]   ;;  %v653_v17 = vld [vmem:[#allocation7 + $0x30] sm:$0xff]   ;;  %v647_v18 = vld [vmem:[#allocation5 + $0x8] sm:$0xff]   ;;  %v509_v23 = vcombine.low %v81_v12, %v81_v12 }
  0x39   :  { %548 = vmatpush3.bf16.msra.mxu0 %v637_v4  ;;  %586 = vmatpush3.bf16.msra.mxu1 %v652_v14  ;;  %v648_v19 = vld [vmem:[#allocation5 + $0x40] sm:$0xff]   ;;  %v654_v20 = vld [vmem:[#allocation7 + $0x28] sm:$0xff]   ;;  %v656_v24 = vld [vmem:[#allocation7 + $0x18] sm:$0xff]  }
  0x3a   :  { %549 = vmatprep.subr.bf16.mxu0 %v638_v5  ;;  %256 = vmatprep.mubr.bf16.mxu0 %v510_v13  ;;  %v649_v21 = vld [vmem:[#allocation5] sm:$0xff]   ;;  %v657_v25 = vld [vmem:[#allocation7 + $0x10] sm:$0xff]   ;;  %v658_v26 = vld [vmem:[#allocation7 + $0x8] sm:$0xff]  }
  0x3b   :  { %587 = vmatprep.subr.bf16.mxu1 %v782_v0  ;;  %v655_v22 = vld [vmem:[#allocation7 + $0x20] sm:$0xff]   ;;  %v660_v28 = vld [vmem:[#allocation8 + $0x38] sm:$0xff]   ;;  %v661_v29 = vld [vmem:[#allocation8 + $0x30] sm:$0xff]  }
  0x3c   :  { %v659_v27 = vld [vmem:[#allocation7] sm:$0xff]   ;;  %v662_v30 = vld [vmem:[#allocation8 + $0x28] sm:$0xff]   ;;  %v664_v32 = vld [vmem:[#allocation8 + $0x18] sm:$0xff]  }
  0x3d   :  { %550 = vmatpush3.bf16.msra.mxu0 %v639_v6  ;;  %588 = vmatpush3.bf16.msra.mxu1 %v653_v17  ;;  %v663_v31 = vld [vmem:[#allocation8 + $0x20] sm:$0xff]   ;;  %v665_v33 = vld [vmem:[#allocation8 + $0x10] sm:$0xff]   ;;  %v508_v35 = vld [vmem:[%s878_s2] ss:$0 sm:$0xff] }
  0x3e   :  { %551 = vmatprep.subr.bf16.mxu0 %v640_v7  ;;  %589 = vmatprep.subr.bf16.mxu1 %v782_v0  ;;  %v666_v43 = vld [vmem:[#allocation8 + $0x8] sm:$0xff]   ;;  %v667_v44 = vld [vmem:[#allocation8] sm:$0xff]   ;;  %v527_v45 = vld [vmem:[%s880_s4] ss:$0 sm:$0xff]  ;;  %s748_s4 = scalar_lea.vmem %s498_s25, 128 }
  0x3f   :  { %v536_v53 = vld [vmem:[%s882_s6] ss:$0 sm:$0xff]  ;;  %p749_p6 = scmp.ne.s32.totalorder %s498_s25, %s748_s4  ;;  %p754_p8 = scmp.lt.s32.totalorder %s748_s4, %s748_s4 }
  0x41   :  { %552 = vmatpush3.bf16.msra.mxu0 %v641_v8  ;;  %590 = vmatpush3.bf16.msra.mxu1 %v654_v20  ;;  %p755_p9 = por %p754_p8, %p753_p7 }
  0x42   :  { %553 = vmatprep.subr.bf16.mxu0 %v642_v9  ;;  %591 = vmatprep.subr.bf16.mxu1 %v782_v0 }
  0x43   :  { %p756_p10 = pnand %p755_p9, %p749_p6 }
  0x45   :  { %554 = vmatpush3.bf16.msra.mxu0 %v643_v10  ;;  %592 = vmatpush3.bf16.msra.mxu1 %v655_v22 }
  0x46   :  { %555 = vmatprep.subr.bf16.mxu0 %v644_v11  ;;  %593 = vmatprep.subr.bf16.mxu1 %v782_v0 }
  0x49   :  { %556 = vmatpush3.bf16.msra.mxu0 %v645_v15  ;;  %594 = vmatpush3.bf16.msra.mxu1 %v656_v24 }
  0x4a   :  { %557 = vmatprep.subr.bf16.mxu0 %v646_v16  ;;  %595 = vmatprep.subr.bf16.mxu1 %v782_v0 }
  0x4d   :  { %558 = vmatpush3.bf16.msra.mxu0 %v647_v18  ;;  %596 = vmatpush3.bf16.msra.mxu1 %v657_v25 }
  0x4e   :  { %559 = vmatprep.subr.bf16.mxu0 %v648_v19  ;;  %597 = vmatprep.subr.bf16.mxu1 %v782_v0 }
  0x51   :  { %560 = vmatpush3.bf16.msra.mxu0 %v649_v21  ;;  %598 = vmatpush3.bf16.msra.mxu1 %v658_v26 }
  0x52   :  { %605 = vmatprep.subr.bf16.mxu0 %v782_v0  ;;  %599 = vmatprep.subr.bf16.mxu1 %v782_v0 }
  0x54   :  { %257 = vmatmul.mubr.bf16.vlgmr.msra.gmra.mxu0 %v509_v23 }
  0x55   :  { %600 = vmatpush3.bf16.msra.mxu1 %v659_v27  ;;  %621 = vmatprep.mubr.msk.bf16.mxu0 %vm783_vm0, %v782_v0 }
  0x56   :  { %606 = vmatpush3.bf16.msra.mxu0 %v660_v28 }
  0x57   :  { %607 = vmatprep.subr.bf16.mxu0 %v782_v0 }
  0x5a   :  { %608 = vmatpush3.bf16.msra.mxu0 %v661_v29 }
  0x5b   :  { %609 = vmatprep.subr.bf16.mxu0 %v782_v0 }
  0x5e   :  { %610 = vmatpush3.bf16.msra.mxu0 %v662_v30 }
  0x5f   :  { %611 = vmatprep.subr.bf16.mxu0 %v782_v0 }
  0x62   :  { %612 = vmatpush3.bf16.msra.mxu0 %v663_v31 }
  0x63   :  { %613 = vmatprep.subr.bf16.mxu0 %v782_v0 }
  0x66   :  { %614 = vmatpush3.bf16.msra.mxu0 %v664_v32 }
  0x67   :  { %615 = vmatprep.subr.bf16.mxu0 %v782_v0 }
  0x6a   :  { %616 = vmatpush3.bf16.msra.mxu0 %v665_v33 }
  0x6b   :  { %617 = vmatprep.subr.bf16.mxu0 %v782_v0 }
  0x6e   :  { %618 = vmatpush3.bf16.msra.mxu0 %v666_v43 }
  0x6f   :  { %619 = vmatprep.subr.bf16.mxu0 %v782_v0 }
  0x72   :  { %620 = vmatpush3.bf16.msra.mxu0 %v667_v44 }
 0x114   :  { %v561_v34 = vpop.f32.mrf.mxu0 }
 0x116   :  { %v562_v36 = vpop.f32.mrf.mxu0 }
 0x117   :  { %v563_v37 = vadd.f32 %v562_v36, %v561_v34 }
 0x118   :  { %v564_v38 = vpop.f32.mrf.mxu0 }
 0x119   :  { %v259_v39 = vadd.f32 %v563_v37, %v508_v35 }
 0x11a   :  { %v565_v40 = vpop.f32.mrf.mxu0 }
 0x11b   :  { %v264_v41 = vmax.f32 %v259_v39, 0.0 }
 0x11d   :  { %v265_v42 = vpack.c.bf16 %v264_v41, %v264_v41 }
 0x11f   :  { %602 = vmatmul.mubr.bf16.vlgmr.msra.gmra.mxu1 %v265_v42 }
 0x1df   :  { %v371_v46 = vpop.f32.mrf.mxu1 }
 0x1e0   :  { %v372_v47 = vadd.f32 %v527_v45, %v371_v46 }
 0x1e1   :  { %v603_v48 = vpop.f32.mrf.mxu1 }
 0x1e2   :  { %v377_v49 = vmax.f32 %v372_v47, 0.0 }
 0x1e3   :  { %v374_v50 = vpop.f32.mrf.mxu1 }
 0x1e4   :  { %v378_v51 = vpack.c.bf16 %v377_v49, %v377_v49 }
 0x1e5   :  { %v604_v52 = vpop.f32.mrf.mxu1 }
 0x1e6   :  { %622 = vmatmul.mubr.bf16.vlgmr.msra.gmra.mxu0 %v378_v51 }
 0x2a6   :  { %v484_v54 = vpop.f32.mrf.mxu0 }
 0x2a7   :  { %v485_v55 = vadd.f32 %v536_v53, %v484_v54 }
 0x2a8   :  { %v623_v56 = vpop.f32.mrf.mxu0 }
 0x2a9   :  { %490 = vst [vmem:[#allocation10] sm:$0xff] %v485_v55 }
 0x2aa   :  { %v487_v57 = vpop.f32.mrf.mxu0 }
 0x2ab   :  { %759 = shalt.err (!%p756_p10)
}
 0x2ac   :  { %500 = dma.vmem_to_hbm [thread:$0]  %s498_s25, 128, %s883_s7, [#allocation4]   ;;  %v624_v58 = vpop.f32.mrf.mxu0 }
 0x2ad   :  { %774 = dma.done.wait [#allocation4], 128  }
 0x2ae   :  { %775 = vsyncadd [#allocation4], 4294967168 }
 0x2af   :  { %504 = vsyncpa [#allocation3], 1 }
 0x2b0   :  { %505 = vsyncpa [#allocation6], 1 }
 0x2b1   :  { %506 = vsyncpa [#allocation9], 1 }
 0x2b2   :  { %507 = vsyncpa [#allocation4], 1 }

</bundles_post_ra>
